<compile_context>
chip_gen: v5e
topology: v5e:2x2
jax: 0.10.0
libtpu: 0.0.40
codegen_flags: <defaults>
</compile_context>

<pallas_src>
import math

import jax
import jax.numpy as jnp
from jax.experimental import pallas as pl
from jax.experimental.pallas import tpu as pltpu


# ---------------------------------------------------------------------------
# Kernel 1: conv-as-GEMM + bias, computed directly in NCHW output orientation:
#     Y[b] = W_flat (Cout, Kdim) @ patches_T[b] (Kdim, P) + bias
# so the (B, Cout, P) output is already in torch's NCHW memory order and the
# torch `.view(B, -1, D)` becomes a free contiguous reshape (no XLA transpose).
# A whole batch-block is processed per grid step (static unroll).
# ---------------------------------------------------------------------------
def _conv_gemm_kernel(pt_ref, w_ref, b_ref, o_ref):
    # pt_ref: (Bblk, Kdim, P)  w_ref: (Cout, Kdim)  b_ref: (Cout, 1)  o_ref: (Bblk, Cout, P)
    w = w_ref[...]
    bias = b_ref[...]
    for i in range(o_ref.shape[0]):            # Bblk is static -> unrolled
        y = jnp.dot(w, pt_ref[i], preferred_element_type=jnp.float32)
        o_ref[i] = (y + bias).astype(o_ref.dtype)


def _pick_batch_block(batch, kdim, cout, p, *, budget_bytes=8 << 20):
    # Largest divisor of `batch` whose (in + out, double-buffered) block fits the budget.
    per_batch = (kdim * p + cout * p) * 4 * 2
    bblk = max(1, min(batch, budget_bytes // max(per_batch, 1)))
    while batch % bblk:
        bblk -= 1
    return bblk


def conv_gemm_nchw(patches_t, w_flat, bias2d, bblk):
    B, Kdim, P = patches_t.shape
    Cout = w_flat.shape[0]
    return pl.pallas_call(
        _conv_gemm_kernel,
        out_shape=jax.ShapeDtypeStruct((B, Cout, P), jnp.float32),
        grid_spec=pltpu.PrefetchScalarGridSpec(
            num_scalar_prefetch=0,
            grid=(B // bblk,),
            in_specs=[
                pl.BlockSpec((bblk, Kdim, P), lambda b: (b, 0, 0)),
                pl.BlockSpec((Cout, Kdim), lambda b: (0, 0)),
                pl.BlockSpec((Cout, 1), lambda b: (0, 0)),
            ],
            out_specs=pl.BlockSpec((bblk, Cout, P), lambda b: (b, 0, 0)),
        ),
        compiler_params=pltpu.CompilerParams(dimension_semantics=("parallel",)),
    )(patches_t, w_flat, bias2d)


# ---------------------------------------------------------------------------
# Kernel 2: squash on a lane-dense (rows, width) view of the NCHW-flat buffer.
# Each row holds width // D whole capsules side by side (width % D == 0), so
# per-capsule sum-of-squares / gain broadcast are two tiny 0/1 matmuls on the
# otherwise-idle MXU.  pool / unpool are constant resident inputs (hoisted).
# ---------------------------------------------------------------------------
def _squash_rows_kernel(x_ref, pool_ref, unpool_ref, o_ref):
    # x_ref: (Rblk, W)  pool_ref: (W, G)  unpool_ref: (G, W)  o_ref: (Rblk, W)
    x = x_ref[...]
    sn = jnp.dot(x * x, pool_ref[...], preferred_element_type=jnp.float32)         # (Rblk, G)
    # squash gain = (sn / (1 + sn)) / sqrt(sn); rsqrt sits on the EUP slot.
    gain = jax.lax.rsqrt(sn) * (sn / (1.0 + sn))                                    # (Rblk, G)
    gain_full = jnp.dot(gain, unpool_ref[...], preferred_element_type=jnp.float32)  # (Rblk, W)
    o_ref[...] = (x * gain_full).astype(o_ref.dtype)


def squash_flat(flat, caps_dim, *, rblk_max=512):
    """Squash groups of `caps_dim` consecutive elements of a flat f32 vector."""
    total = flat.shape[0]
    # Lane-dense row width holding whole capsules: lcm(128, D).  Zero-pad up to a
    # whole number of row blocks; padding is whole capsules and is sliced off after.
    width = 128 * caps_dim // math.gcd(128, caps_dim)
    rows_total = (total + width - 1) // width
    rblk = min(rows_total, rblk_max)                 # full dim OR multiple of 8 (512)
    rows_padded = ((rows_total + rblk - 1) // rblk) * rblk
    pad = rows_padded * width - total
    if pad:
        flat = jnp.concatenate([flat, jnp.zeros((pad,), flat.dtype)])
    rows = flat.reshape(rows_padded, width)          # free contiguous reshape

    # 0/1 pool (per-capsule sum) and unpool (= pool.T, gain broadcast), built once
    # in the wrapper instead of re-issuing iota/compare/cast on the VPU every step.
    num_groups = width // caps_dim
    grp = jnp.arange(width, dtype=jnp.int32) // caps_dim
    pool = (grp[:, None] == jnp.arange(num_groups, dtype=jnp.int32)[None, :]).astype(jnp.float32)
    unpool = pool.T

    out = pl.pallas_call(
        _squash_rows_kernel,
        out_shape=jax.ShapeDtypeStruct(rows.shape, rows.dtype),
        grid_spec=pltpu.PrefetchScalarGridSpec(
            num_scalar_prefetch=0,
            grid=(rows_padded // rblk,),
            in_specs=[
                pl.BlockSpec((rblk, width), lambda i: (i, 0)),
                pl.BlockSpec((width, num_groups), lambda i: (0, 0)),
                pl.BlockSpec((num_groups, width), lambda i: (0, 0)),
            ],
            out_specs=pl.BlockSpec((rblk, width), lambda i: (i, 0)),
        ),
        compiler_params=pltpu.CompilerParams(dimension_semantics=("parallel",)),
    )(rows, pool, unpool)
    return out.reshape(-1)[:total]


# ---------------------------------------------------------------------------
# Glue: im2col built directly in the (B, Cin*K*K, Hp*Wp) orientation (XLA side).
# ---------------------------------------------------------------------------
def im2col_t(x, kernel_size, stride):
    # x: (B, C, H, W) -> (B, C*K*K, Hp*Wp); Kdim ordered (c, ki, kj), P in (h', w') order.
    B, C, H, W = x.shape
    K = kernel_size
    Hp = (H - K) // stride + 1
    Wp = (W - K) // stride + 1
    cols = []
    for ki in range(K):
        for kj in range(K):
            sl = x[:, :, ki : ki + stride * Hp : stride, kj : kj + stride * Wp : stride]
            cols.append(sl)  # (B, C, Hp, Wp)
    p = jnp.stack(cols, axis=0).reshape(K, K, B, C, Hp, Wp)
    p = jnp.transpose(p, (2, 3, 0, 1, 4, 5))          # (B, C, K, K, Hp, Wp)
    p = p.reshape(B, C * K * K, Hp * Wp)              # (B, Kdim, P)
    return p, Hp, Wp


def primary_caps_forward(x, conv_w, conv_b, kernel_size, stride, out_channels):
    """x: (B, C_in, H, W)   conv_w: (C_out_total, C_in, K, K)   conv_b: (C_out_total,)"""
    B = x.shape[0]
    Cout = conv_w.shape[0]
    pt, Hp, Wp = im2col_t(x, kernel_size, stride)     # (B, Kdim, P)
    Kdim, P = pt.shape[1], pt.shape[2]
    w_flat = conv_w.reshape(Cout, -1)                 # (Cout, Kdim), matches Kdim ordering
    bias2d = conv_b.reshape(Cout, 1)

    bblk = _pick_batch_block(B, Kdim, Cout, P)
    conv_nchw = conv_gemm_nchw(pt, w_flat, bias2d, bblk)   # (B, Cout, P) == torch NCHW order

    D = out_channels
    assert (Cout * P) % D == 0, "conv output per batch must split into whole capsules"
    flat = conv_nchw.reshape(-1)                      # free contiguous reshape
    squashed = squash_flat(flat, D)                   # lane-dense squash
    return squashed.reshape(B, (Cout * P) // D, D)    # free contiguous reshape


if __name__ == "__main__":
    # PrimaryCaps(num_conv_units=8, in_channels=4, out_channels=8, kernel_size=3, stride=2)
    num_conv_units = 8
    in_channels = 4
    out_channels = 8
    kernel_size = 3
    stride = 2
    B, H, W = 2, 16, 16
    Cout_total = out_channels * num_conv_units  # 64

    key = jax.random.PRNGKey(0)
    kx, kw, kb = jax.random.split(key, 3)
    x = jax.random.normal(kx, (B, in_channels, H, W), dtype=jnp.float32)
    conv_w = 0.1 * jax.random.normal(
        kw, (Cout_total, in_channels, kernel_size, kernel_size), dtype=jnp.float32
    )
    conv_b = 0.1 * jax.random.normal(kb, (Cout_total,), dtype=jnp.float32)

    out = primary_caps_forward(x, conv_w, conv_b, kernel_size, stride, out_channels)
    out = jax.block_until_ready(out)

    # Self-check against a pure-JAX reference of the same forward pass.
    ref_conv = jax.lax.conv_general_dilated(
        x, conv_w, window_strides=(stride, stride), padding="VALID",
        dimension_numbers=("NCHW", "OIHW", "NCHW"),
        precision=jax.lax.Precision.HIGHEST,
    ) + conv_b[None, :, None, None]
    ref = ref_conv.reshape(B, -1, out_channels)
    sn = jnp.sum(ref * ref, axis=-1, keepdims=True)
    ref = (sn / (1.0 + sn)) * ref / jnp.sqrt(sn)
    Hp = (H - kernel_size) // stride + 1
    assert out.shape == ref.shape == (B, Cout_total * Hp * Hp // out_channels, out_channels)
    assert jnp.allclose(out, ref, atol=1e-5, rtol=1e-5), "mismatch vs reference"

    print("KERNEL_OK")
</pallas_src>

<mosaic_0001>
module attributes {stable_mosaic.version = 11 : i64} {
  func.func @_conv_gemm_kernel(%arg0: i32, %arg1: memref<2x36x49xf32, #tpu.memory_space<vmem>>, %arg2: memref<64x36xf32, #tpu.memory_space<vmem>>, %arg3: memref<64x1xf32, #tpu.memory_space<vmem>>, %arg4: memref<2x64x49xf32, #tpu.memory_space<vmem>>) attributes {dimension_semantics = [#tpu.dimension_semantics<parallel>], iteration_bounds = array<i64: 1>, scalar_prefetch = 0 : i64, scratch_operands = 0 : i64, tpu.core_type = #tpu.core_type<tc>, window_params = [{transform_indices = @transform_0, window_bounds = array<i64: 2, 36, 49>}, {pipeline_mode = #tpu.pipeline_mode<synchronous>, transform_indices = @transform_1, window_bounds = array<i64: 64, 36>}, {pipeline_mode = #tpu.pipeline_mode<synchronous>, transform_indices = @transform_2, window_bounds = array<i64: 64, 1>}, {transform_indices = @transform_3, window_bounds = array<i64: 2, 64, 49>}]} {
    %c0 = arith.constant 0 : index
    %c0_0 = arith.constant 0 : index
    %0 = vector.load %arg2[%c0, %c0_0] : memref<64x36xf32, #tpu.memory_space<vmem>>, vector<64x36xf32>
    %c0_1 = arith.constant 0 : index
    %c0_2 = arith.constant 0 : index
    %1 = vector.load %arg3[%c0_1, %c0_2] : memref<64x1xf32, #tpu.memory_space<vmem>>, vector<64x1xf32>
    %c0_3 = arith.constant 0 : index
    %c0_4 = arith.constant 0 : index
    %c0_5 = arith.constant 0 : index
    %2 = vector.load %arg1[%c0_3, %c0_4, %c0_5] : memref<2x36x49xf32, #tpu.memory_space<vmem>>, vector<1x36x49xf32>
    %3 = vector.shape_cast %2 : vector<1x36x49xf32> to vector<36x49xf32>
    %cst = arith.constant dense<0.000000e+00> : vector<64x49xf32>
    %4 = tpu.matmul %0, %3, %cst {dimension_numbers = #tpu.dot_dimension_numbers<[1], [0], [0], [1], [0, 0, 1, 1], [], []>} : vector<64x36xf32>, vector<36x49xf32>, vector<64x49xf32> -> vector<64x49xf32>
    %5 = vector.broadcast %1 : vector<64x1xf32> to vector<64x49xf32>
    %6 = arith.addf %4, %5 : vector<64x49xf32>
    %c0_6 = arith.constant 0 : index
    %c0_7 = arith.constant 0 : index
    %c0_8 = arith.constant 0 : index
    %7 = vector.load %arg4[%c0_6, %c0_7, %c0_8] : memref<2x64x49xf32, #tpu.memory_space<vmem>>, vector<1x64x49xf32>
    %8 = vector.shape_cast %7 : vector<1x64x49xf32> to vector<64x49xf32>
    %9 = vector.shape_cast %6 : vector<64x49xf32> to vector<1x64x49xf32>
    tpu.vector_store %arg4[%c0_6, %c0_7, %c0_8], %9 {strides = array<i32>} : memref<2x64x49xf32, #tpu.memory_space<vmem>>, vector<1x64x49xf32>,
    %c1 = arith.constant 1 : index
    %c0_9 = arith.constant 0 : index
    %c0_10 = arith.constant 0 : index
    %10 = vector.load %arg1[%c1, %c0_9, %c0_10] : memref<2x36x49xf32, #tpu.memory_space<vmem>>, vector<1x36x49xf32>
    %11 = vector.shape_cast %10 : vector<1x36x49xf32> to vector<36x49xf32>
    %cst_11 = arith.constant dense<0.000000e+00> : vector<64x49xf32>
    %12 = tpu.matmul %0, %11, %cst_11 {dimension_numbers = #tpu.dot_dimension_numbers<[1], [0], [0], [1], [0, 0, 1, 1], [], []>} : vector<64x36xf32>, vector<36x49xf32>, vector<64x49xf32> -> vector<64x49xf32>
    %13 = vector.broadcast %1 : vector<64x1xf32> to vector<64x49xf32>
    %14 = arith.addf %12, %13 : vector<64x49xf32>
    %c1_12 = arith.constant 1 : index
    %c0_13 = arith.constant 0 : index
    %c0_14 = arith.constant 0 : index
    %15 = vector.load %arg4[%c1_12, %c0_13, %c0_14] : memref<2x64x49xf32, #tpu.memory_space<vmem>>, vector<1x64x49xf32>
    %16 = vector.shape_cast %15 : vector<1x64x49xf32> to vector<64x49xf32>
    %17 = vector.shape_cast %14 : vector<64x49xf32> to vector<1x64x49xf32>
    tpu.vector_store %arg4[%c1_12, %c0_13, %c0_14], %17 {strides = array<i32>} : memref<2x64x49xf32, #tpu.memory_space<vmem>>, vector<1x64x49xf32>,
    return
  }
  func.func @transform_0(%arg0: i32) -> (i32, i32, i32) {
    %c0_i32 = arith.constant 0 : i32
    %c0_i32_0 = arith.constant 0 : i32
    %c0_i32_1 = arith.constant 0 : i32
    return %arg0, %c0_i32, %c0_i32_0 : i32, i32, i32
  }
  func.func @transform_1(%arg0: i32) -> (i32, i32) {
    %c0_i32 = arith.constant 0 : i32
    %c0_i32_0 = arith.constant 0 : i32
    %c0_i32_1 = arith.constant 0 : i32
    return %c0_i32, %c0_i32_0 : i32, i32
  }
  func.func @transform_2(%arg0: i32) -> (i32, i32) {
    %c0_i32 = arith.constant 0 : i32
    %c0_i32_0 = arith.constant 0 : i32
    %c0_i32_1 = arith.constant 0 : i32
    return %c0_i32, %c0_i32_0 : i32, i32
  }
  func.func @transform_3(%arg0: i32) -> (i32, i32, i32) {
    %c0_i32 = arith.constant 0 : i32
    %c0_i32_0 = arith.constant 0 : i32
    %c0_i32_1 = arith.constant 0 : i32
    return %arg0, %c0_i32, %c0_i32_0 : i32, i32, i32
  }
}

</mosaic_0001>

<bundles_post_ra>
// kernel: tpu_custom_call.1
= control target key start
LH: loop header
LB: loop body
LE: loop exit
PB: predicated region body
PF: predicated region fallthrough
CT: control target
= control target key end

     0   :  { %vm100_vm0 = vcmask 1043456   ;;  %v262_v3 = vmov 0   ;;  %vm75_vm1 = vcmask 293888   ;;  %vm145_vm2 = vcmask 400384   ;;  %s441_s0 = inlined_call_operand.vmem [shape: f32[2,36,49], index: 0, kind: input, shape index: {}]   ;;  %s442_s1 = inlined_call_operand.vmem [shape: f32[64,36], index: 1, kind: input, shape index: {}]   ;;  %s443_s2 = inlined_call_operand.vmem [shape: f32[64,1], index: 2, kind: input, shape index: {}]   ;;  %s444_s3 = inlined_call_operand.vmem [shape: f32[2,64,49], index: 3, kind: output, shape index: {}]  }
   0x1   :  { %v34_v0 = vld [vmem:[%s441_s0 + $0x20] sm:$0xf]  ;;  %v230_v1 = vld [vmem:[%s441_s0 + $0x48] sm:$0xf]  ;;  %v33_v2 = vld [vmem:[%s441_s0 + $0x18] sm:$0xff]  ;;  %260 = vset.pattern.permute.xlu1 %v262_v3  ;;  %259 = vset.pattern.permute.xlu0 %v262_v3 }
   0x2   :  { %217 = vmatpush.msk.msra.mxu0 %vm100_vm0, %v34_v0  ;;  %248 = vmatpush.msk.msra.mxu2 %vm100_vm0, %v34_v0  ;;  %v229_v4 = vld [vmem:[%s441_s0 + $0x40] sm:$0xff]  ;;  %v32_v5 = vld [vmem:[%s441_s0 + $0x10] sm:$0xff]  ;;  %v228_v6 = vld [vmem:[%s441_s0 + $0x38] sm:$0xff] }
   0x3   :  { %231 = vmatpush.msk.msra.mxu1 %vm100_vm0, %v230_v1  ;;  %253 = vmatpush.msk.msra.mxu3 %vm100_vm0, %v230_v1  ;;  %v31_v7 = vld [vmem:[%s441_s0 + $0x8] sm:$0xff]  ;;  %v227_v8 = vld [vmem:[%s441_s0 + $0x30] sm:$0xff]  ;;  %v30_v9 = vld [vmem:[%s441_s0] sm:$0xff] }
   0x4   :  { %116 = vmatpush.msra.mxu0 %v33_v2  ;;  %249 = vmatpush.msra.mxu2 %v33_v2  ;;  %v226_v10 = vld [vmem:[%s441_s0 + $0x28] sm:$0xff]  ;;  %v14_v11 = vld [vmem:[%s442_s1] sm:$0xff]  ;;  %v24_v13 = vld [vmem:[%s443_s2 + $0x10] sm:$0xff] }
   0x5   :  { %175 = vmatpush.msra.mxu1 %v229_v4  ;;  %254 = vmatpush.msra.mxu3 %v229_v4  ;;  %v18_v12 = vld [vmem:[%s442_s1 + $0x20] sm:$0xff]  ;;  %v15_v16 = vld [vmem:[%s442_s1 + $0x8] sm:$0xff]  ;;  %v25_v18 = vld [vmem:[%s443_s2 + $0x18] sm:$0xff] }
   0x6   :  { %117 = vmatpush.msra.mxu0 %v32_v5  ;;  %250 = vmatpush.msra.mxu2 %v32_v5  ;;  %v22_v14 = vld [vmem:[%s443_s2] sm:$0xff]  ;;  %v19_v17 = vld [vmem:[%s442_s1 + $0x28] sm:$0xff]  ;;  %v16_v21 = vld [vmem:[%s442_s1 + $0x10] sm:$0xff] }
   0x7   :  { %176 = vmatpush.msra.mxu1 %v228_v6  ;;  %255 = vmatpush.msra.mxu3 %v228_v6  ;;  %v26_v15 = vld [vmem:[%s443_s2 + $0x20] sm:$0xff]  ;;  %v23_v19 = vld [vmem:[%s443_s2 + $0x8] sm:$0xff]  ;;  %v20_v22 = vld [vmem:[%s442_s1 + $0x30] sm:$0xff] }
   0x8   :  { %118 = vmatpush.msra.mxu0 %v31_v7  ;;  %251 = vmatpush.msra.mxu2 %v31_v7  ;;  %v27_v20 = vld [vmem:[%s443_s2 + $0x28] sm:$0xff]  ;;  %v29_v23 = vld [vmem:[%s443_s2 + $0x38] sm:$0xff]  ;;  %v28_v24 = vld [vmem:[%s443_s2 + $0x30] sm:$0xff] }
   0x9   :  { %177 = vmatpush.msra.mxu1 %v227_v8  ;;  %256 = vmatpush.msra.mxu3 %v227_v8  ;;  %v17_v25 = vld [vmem:[%s442_s1 + $0x18] sm:$0xff] }
   0xa   :  { %119 = vmatpush.msra.mxu0 %v30_v9  ;;  %252 = vmatpush.msra.mxu2 %v30_v9  ;;  %v21_v26 = vld [vmem:[%s442_s1 + $0x38] sm:$0xff] }
   0xb   :  { %178 = vmatpush.msra.mxu1 %v226_v10  ;;  %257 = vmatpush.msra.mxu3 %v226_v10 }
   0xc   :  { %218 = vmatmul.msk.f32.vlgmr.msra.gmra.mxu0 %vm75_vm1, %v14_v11  ;;  %222 = vmatmul.msk.f32.vlgmr.msra.gmra.mxu2 %vm75_vm1, %v18_v12 }
   0xd   :  { %232 = vmatmul.msk.f32.vlgmr.msra.gmra.mxu1 %vm75_vm1, %v14_v11  ;;  %236 = vmatmul.msk.f32.vlgmr.msra.gmra.mxu3 %vm75_vm1, %v18_v12 }
   0xe   :  { %47 = vperm.xlu1 %260, %v24_v13   ;;  %37 = vperm.xlu0 %259, %v22_v14  }
   0xf   :  { %261 = vset.pattern.permute.xlu2 %v262_v3 }
  0x10   :  { %57 = vperm.xlu2 %261, %v26_v15  }
  0x14   :  { %219 = vmatmul.msk.f32.gmra.mxu0 %vm75_vm1, %v15_v16  ;;  %223 = vmatmul.msk.f32.gmra.mxu2 %vm75_vm1, %v19_v17 }
  0x15   :  { %233 = vmatmul.msk.f32.gmra.mxu1 %vm75_vm1, %v15_v16  ;;  %237 = vmatmul.msk.f32.gmra.mxu3 %vm75_vm1, %v19_v17 }
  0x16   :  { %52 = vperm.xlu1 %260, %v25_v18   ;;  %42 = vperm.xlu0 %259, %v23_v19  }
  0x18   :  { %62 = vperm.xlu2 %261, %v27_v20  }
  0x1c   :  { %220 = vmatmul.msk.f32.gmra.mxu0 %vm75_vm1, %v16_v21  ;;  %224 = vmatmul.msk.f32.gmra.mxu2 %vm75_vm1, %v20_v22 }
  0x1d   :  { %234 = vmatmul.msk.f32.gmra.mxu1 %vm75_vm1, %v16_v21  ;;  %238 = vmatmul.msk.f32.gmra.mxu3 %vm75_vm1, %v20_v22 }
  0x1e   :  { %72 = vperm.xlu1 %260, %v29_v23   ;;  %67 = vperm.xlu0 %259, %v28_v24  }
  0x24   :  { %221 = vmatmul.msk.f32.gmra.mxu0 %vm75_vm1, %v17_v25  ;;  %225 = vmatmul.msk.f32.gmra.mxu2 %vm75_vm1, %v21_v26 }
  0x25   :  { %235 = vmatmul.msk.f32.gmra.mxu1 %vm75_vm1, %v17_v25  ;;  %239 = vmatmul.msk.f32.gmra.mxu3 %vm75_vm1, %v21_v26 }
  0x6a   :  { %v58_v32 = vpop.permute.xlu2 %57 }
  0x72   :  { %v63_v43 = vpop.permute.xlu2 %62 }
  0x80   :  { %v38_v27 = vpop.permute.xlu0 %37  ;;  %v48_v41 = vpop.permute.xlu1 %47 }
  0x88   :  { %v43_v36 = vpop.permute.xlu0 %42  ;;  %v53_v52 = vpop.permute.xlu1 %52 }
  0x89   :  { %v121_v28 = vpop.f32.mrf.mxu0 }
  0x8a   :  { %v122_v29 = vadd.f32 %v121_v28, %v38_v27  ;;  %v180_v30 = vpop.f32.mrf.mxu1 }
  0x8b   :  { %v181_v31 = vadd.f32 %v180_v30, %v38_v27 }
  0x8c   :  { %146 = vst.msk [vmem:[%s444_s3] sm:$0xff] %vm145_vm2, %v122_v29 }
  0x8d   :  { %240 = vst.msk [vmem:[%s444_s3 + $0x40] sm:$0xff] %vm145_vm2, %v181_v31 }
  0x8f   :  { %v133_v33 = vpop.f32.mrf.mxu2 }
  0x90   :  { %v134_v34 = vadd.f32 %v133_v33, %v58_v32  ;;  %v192_v35 = vpop.f32.mrf.mxu3  ;;  %v68_v53 = vpop.permute.xlu0 %67 }
  0x91   :  { %v193_v37 = vadd.f32 %v192_v35, %v58_v32  ;;  %v124_v38 = vpop.f32.mrf.mxu0  ;;  %v73_v62 = vpop.permute.xlu1 %72 }
  0x92   :  { %150 = vst.msk [vmem:[%s444_s3 + $0x20] sm:$0xff] %vm145_vm2, %v134_v34  ;;  %v125_v39 = vadd.f32 %v124_v38, %v43_v36  ;;  %v183_v40 = vpop.f32.mrf.mxu1 }
  0x93   :  { %244 = vst.msk [vmem:[%s444_s3 + $0x60] sm:$0xff] %vm145_vm2, %v193_v37  ;;  %v184_v42 = vadd.f32 %v183_v40, %v43_v36 }
  0x94   :  { %147 = vst.msk [vmem:[%s444_s3 + $0x8] sm:$0xff] %vm145_vm2, %v125_v39 }
  0x95   :  { %241 = vst.msk [vmem:[%s444_s3 + $0x48] sm:$0xff] %vm145_vm2, %v184_v42 }
  0x97   :  { %v136_v44 = vpop.f32.mrf.mxu2 }
  0x98   :  { %v137_v45 = vadd.f32 %v136_v44, %v63_v43  ;;  %v195_v46 = vpop.f32.mrf.mxu3 }
  0x99   :  { %v196_v47 = vadd.f32 %v195_v46, %v63_v43  ;;  %v127_v48 = vpop.f32.mrf.mxu0 }
  0x9a   :  { %151 = vst.msk [vmem:[%s444_s3 + $0x28] sm:$0xff] %vm145_vm2, %v137_v45  ;;  %v128_v49 = vadd.f32 %v127_v48, %v48_v41  ;;  %v186_v50 = vpop.f32.mrf.mxu1 }
  0x9b   :  { %245 = vst.msk [vmem:[%s444_s3 + $0x68] sm:$0xff] %vm145_vm2, %v196_v47  ;;  %v187_v51 = vadd.f32 %v186_v50, %v48_v41 }
  0x9c   :  { %148 = vst.msk [vmem:[%s444_s3 + $0x10] sm:$0xff] %vm145_vm2, %v128_v49 }
  0x9d   :  { %242 = vst.msk [vmem:[%s444_s3 + $0x50] sm:$0xff] %vm145_vm2, %v187_v51 }
  0x9f   :  { %v139_v54 = vpop.f32.mrf.mxu2 }
  0xa0   :  { %v140_v55 = vadd.f32 %v139_v54, %v68_v53  ;;  %v198_v56 = vpop.f32.mrf.mxu3 }
  0xa1   :  { %v199_v57 = vadd.f32 %v198_v56, %v68_v53  ;;  %v130_v58 = vpop.f32.mrf.mxu0 }
  0xa2   :  { %152 = vst.msk [vmem:[%s444_s3 + $0x30] sm:$0xff] %vm145_vm2, %v140_v55  ;;  %v131_v59 = vadd.f32 %v130_v58, %v53_v52  ;;  %v189_v60 = vpop.f32.mrf.mxu1 }
  0xa3   :  { %246 = vst.msk [vmem:[%s444_s3 + $0x70] sm:$0xff] %vm145_vm2, %v199_v57  ;;  %v190_v61 = vadd.f32 %v189_v60, %v53_v52 }
  0xa4   :  { %149 = vst.msk [vmem:[%s444_s3 + $0x18] sm:$0xff] %vm145_vm2, %v131_v59 }
  0xa5   :  { %243 = vst.msk [vmem:[%s444_s3 + $0x58] sm:$0xff] %vm145_vm2, %v190_v61 }
  0xa7   :  { %v142_v63 = vpop.f32.mrf.mxu2 }
  0xa8   :  { %v143_v0 = vadd.f32 %v142_v63, %v73_v62  ;;  %v201_v1 = vpop.f32.mrf.mxu3 }
  0xa9   :  { %v202_v2 = vadd.f32 %v201_v1, %v73_v62 }
  0xaa   :  { %153 = vst.msk [vmem:[%s444_s3 + $0x38] sm:$0xff] %vm145_vm2, %v143_v0 }
  0xab   :  { %247 = vst.msk [vmem:[%s444_s3 + $0x78] sm:$0xff] %vm145_vm2, %v202_v2 }

</bundles_post_ra>
